<compile_context>
chip_gen: v7x
topology: tpu7x:2x2x1
jax: 0.10.0
libtpu: 0.0.40
codegen_flags: <defaults>
</compile_context>

<pallas_src>
import functools

import jax
import jax.numpy as jnp
from jax.experimental import pallas as pl
from jax.experimental.pallas import tpu as pltpu


def _round_up(x, m):
    return (x + m - 1) // m * m


# --------------------------------------------------------------------------
# Kernel 1: MLM transform head  (x @ W + b -> GELU -> LayerNorm), tiled over T
# --------------------------------------------------------------------------
def _transform_kernel(x_ref, w_ref, b_ref, g_ref, beta_ref, o_ref):
    # bf16 x bf16 -> f32 accumulation on the MXU
    h = jnp.dot(x_ref[...], w_ref[...], preferred_element_type=jnp.float32)
    h = h + b_ref[...]                                   # (1, H) broadcast, f32
    # TODO(synk): PyTorch nn.GELU default is exact erf; tanh approx used here.
    h = jax.nn.gelu(h, approximate=True)
    # one-pass LayerNorm: var = E[x^2] - E[x]^2  (halves cross-lane reductions)
    mu = jnp.mean(h, axis=-1, keepdims=True)
    ex2 = jnp.mean(h * h, axis=-1, keepdims=True)
    var = jnp.maximum(ex2 - mu * mu, 0.0)
    h = (h - mu) * jax.lax.rsqrt(var + 1e-7)
    o_ref[...] = (h * g_ref[...] + beta_ref[...]).astype(o_ref.dtype)


def mlm_transform(x_bf16, w_bf16, b, gamma, beta, *, tm):
    Tp, H = x_bf16.shape
    nT = Tp // tm
    return pl.pallas_call(
        _transform_kernel,
        out_shape=jax.ShapeDtypeStruct((Tp, H), jnp.bfloat16),
        grid_spec=pltpu.PrefetchScalarGridSpec(
            num_scalar_prefetch=0,
            grid=(nT,),
            in_specs=[
                pl.BlockSpec((tm, H), lambda i: (i, 0)),   # x tile (streamed)
                pl.BlockSpec((H, H), lambda i: (0, 0)),    # W     (resident)
                pl.BlockSpec((1, H), lambda i: (0, 0)),    # b
                pl.BlockSpec((1, H), lambda i: (0, 0)),    # gamma
                pl.BlockSpec((1, H), lambda i: (0, 0)),    # beta
            ],
            out_specs=pl.BlockSpec((tm, H), lambda i: (i, 0)),
        ),
        compiler_params=pltpu.CompilerParams(
            dimension_semantics=("parallel",),
            vmem_limit_bytes=32 * 1024 * 1024),
    )(x_bf16, w_bf16, b.reshape(1, H), gamma.reshape(1, H), beta.reshape(1, H))


# --------------------------------------------------------------------------
# Kernel 2: weight-tied LM head + online logsumexp
#   grid = (T tiles [parallel], V tiles [arbitrary])
#   logits tile = h_tile (tm,H) . E_tile (tn,H)^T + bias  (contract on H, bf16)
#   bf16 logits written out; per-token logsumexp carried across the V axis in
#   f32 scratch and emitted on the last V step.  No label gather in the loop.
# --------------------------------------------------------------------------
def _lmhead_kernel(h_ref, e_ref, b_ref, logits_ref, lse_ref, m_sc, l_sc):
    j = pl.program_id(1)
    nj = pl.num_programs(1)

    # (tm, H) x (tn, H) contracted on H  -> (tm, tn), f32 accumulation.
    logits = jax.lax.dot_general(
        h_ref[...], e_ref[...],
        dimension_numbers=(((1,), (1,)), ((), ())),
        preferred_element_type=jnp.float32) + b_ref[...]
    logits_ref[...] = logits.astype(logits_ref.dtype)        # bf16 writeback

    @pl.when(j == 0)
    def _():
        m_sc[...] = jnp.full_like(m_sc, -jnp.inf)
        l_sc[...] = jnp.zeros_like(l_sc)

    # online logsumexp update (f32)
    m_new = jnp.maximum(m_sc[...], jnp.max(logits, axis=-1, keepdims=True))
    alpha = jnp.exp(m_sc[...] - m_new)
    l_sc[...] = alpha * l_sc[...] + jnp.sum(jnp.exp(logits - m_new),
                                            axis=-1, keepdims=True)
    m_sc[...] = m_new

    @pl.when(j == nj - 1)
    def _():
        lse_ref[...] = m_sc[...] + jnp.log(l_sc[...])


def lm_head(h_bf16, emb_bf16, lm_bias_pad, *, tm, tn):
    Tp, H = h_bf16.shape
    Vp = emb_bf16.shape[0]
    nT, nV = Tp // tm, Vp // tn
    cost = pl.CostEstimate(
        flops=2 * Tp * H * Vp,
        transcendentals=Tp * Vp,
        bytes_accessed=(Tp * H * 2            # h tiles
                        + nT * Vp * H * 2     # emb re-streamed per T tile
                        + Tp * Vp * 2         # bf16 logits writeback
                        + Vp * 4 + Tp * 4))
    logits, lse = pl.pallas_call(
        _lmhead_kernel,
        out_shape=(jax.ShapeDtypeStruct((Tp, Vp), jnp.bfloat16),
                   jax.ShapeDtypeStruct((Tp, 1), jnp.float32)),
        grid_spec=pltpu.PrefetchScalarGridSpec(
            num_scalar_prefetch=0,
            grid=(nT, nV),
            in_specs=[
                pl.BlockSpec((tm, H), lambda i, j: (i, 0)),   # h tile
                pl.BlockSpec((tn, H), lambda i, j: (j, 0)),   # emb tile (no .T)
                pl.BlockSpec((1, tn), lambda i, j: (0, j)),   # lm_bias tile
            ],
            out_specs=(pl.BlockSpec((tm, tn), lambda i, j: (i, j)),
                       pl.BlockSpec((tm, 1), lambda i, j: (i, 0))),
            scratch_shapes=[pltpu.VMEM((tm, 1), jnp.float32)] * 2,
        ),
        compiler_params=pltpu.CompilerParams(
            dimension_semantics=("parallel", "arbitrary"),
            vmem_limit_bytes=48 * 1024 * 1024),
        cost_estimate=cost,
    )(h_bf16, emb_bf16, lm_bias_pad.reshape(1, Vp))
    return logits, lse


# --------------------------------------------------------------------------
# one-time parameter preparation (outside the jitted step):
#   bf16 cast + vocab padding of the tied embedding / lm_bias, bf16 dense W.
# --------------------------------------------------------------------------
def prepare_params(params, *, tn_max=1024):
    V, H = params["word_emb"].shape
    tn = min(tn_max, _round_up(V, 128))
    Vp = _round_up(V, tn)
    emb_bf = params["word_emb"].astype(jnp.bfloat16)
    bias = params["lm_bias"].astype(jnp.float32)
    if Vp != V:
        emb_bf = jnp.pad(emb_bf, ((0, Vp - V), (0, 0)))
        # padded vocab columns get -1e30 bias so they never win the softmax
        bias_pad = jnp.pad(bias, (0, Vp - V), constant_values=-1e30)
    else:
        bias_pad = bias
    prepared = {
        "word_emb_bf": emb_bf,                         # (Vp, H) bf16, padded
        "lm_bias_pad": bias_pad,                       # (Vp,)  f32, padded
        "lm_bias": bias,                               # (V,)   f32, unpadded
        "dense_w_bf": params["dense_w"].astype(jnp.bfloat16),
        "dense_b": params["dense_b"].astype(jnp.float32),
        "ln_g": params["ln_g"].astype(jnp.float32),
        "ln_b": params["ln_b"].astype(jnp.float32),
    }
    return prepared, V, tn


# --------------------------------------------------------------------------
# RTDModel.forward equivalent: generator (MLM) forward pass
# --------------------------------------------------------------------------
@functools.partial(jax.jit, static_argnames=("vocab", "tn"))
def rtd_forward(prepared, input_ids, labels, *, vocab, tn):
    emb_bf = prepared["word_emb_bf"]               # (Vp, H) bf16 (pre-padded)
    Vp, H = emb_bf.shape

    ids = input_ids.reshape(-1)
    lbl = labels.reshape(-1).astype(jnp.int32)
    T = ids.shape[0]

    # token tile (lane/MXU friendly); pad T to tile multiple
    tm = min(512, _round_up(T, 8))
    Tp = _round_up(T, tm)

    # embedding lookup (plain JAX gather); ids < vocab so padded rows unused
    h0 = jnp.take(emb_bf, ids, axis=0)             # (T, H) bf16
    if Tp != T:
        h0 = jnp.pad(h0, ((0, Tp - T), (0, 0)))
        lbl = jnp.pad(lbl, (0, Tp - T))            # padded rows: label 0 -> ignored

    # MLM transform head (Pallas, tiled over T)
    h = mlm_transform(h0, prepared["dense_w_bf"], prepared["dense_b"],
                      prepared["ln_g"], prepared["ln_b"], tm=tm)

    # weight-tied LM head + per-token logsumexp (Pallas)
    logits, lse = lm_head(h, emb_bf, prepared["lm_bias_pad"], tm=tm, tn=tn)

    # label logit hoisted out of the V loop: row gather + reduce (f32)
    lbl_emb = jnp.take(emb_bf, lbl, axis=0).astype(jnp.float32)     # (Tp, H)
    label_logit = jnp.sum(h.astype(jnp.float32) * lbl_emb, axis=-1)
    label_logit = label_logit + jnp.take(prepared["lm_bias"],
                                         jnp.clip(lbl, 0, vocab - 1))

    # masked cross-entropy over positions with label > 0
    mask = (lbl > 0).astype(jnp.float32)
    nll = (lse.reshape(Tp) - label_logit) * mask
    loss = jnp.sum(nll) / jnp.maximum(jnp.sum(mask), 1.0)

    return {"logits": logits[:T, :vocab], "loss": loss}


def init_params(key, vocab, hidden):
    k = jax.random.split(key, 4)
    return {
        "word_emb": jax.random.normal(k[0], (vocab, hidden), jnp.float32) * 0.02,
        "dense_w":  jax.random.normal(k[1], (hidden, hidden), jnp.float32) * 0.02,
        "dense_b":  jnp.zeros((hidden,), jnp.float32),
        "ln_g":     jnp.ones((hidden,), jnp.float32),
        "ln_b":     jnp.zeros((hidden,), jnp.float32),
        "lm_bias":  jnp.zeros((vocab,), jnp.float32),
    }


if __name__ == "__main__":
    B, S, H, V = 2, 8, 32, 128
    key = jax.random.PRNGKey(0)
    kp, ki, kl, km = jax.random.split(key, 4)

    params = init_params(kp, V, H)
    input_ids = jax.random.randint(ki, (B, S), 1, V, dtype=jnp.int32)
    # labels: ~half the positions masked (label = true token id > 0), rest 0
    msk = jax.random.bernoulli(km, 0.5, (B, S))
    labels = jnp.where(msk, jax.random.randint(kl, (B, S), 1, V, dtype=jnp.int32), 0)

    prepared, vocab, tn = prepare_params(params)
    out = rtd_forward(prepared, input_ids, labels, vocab=vocab, tn=tn)
    jax.block_until_ready(out)

    assert out["logits"].shape == (B * S, V)
    assert out["loss"].shape == ()
    assert bool(jnp.isfinite(out["loss"]))
    print("KERNEL_OK")
</pallas_src>

<mosaic_0001>
module attributes {stable_mosaic.version = 11 : i64} {
  func.func @_transform_kernel(%arg0: i32, %arg1: memref<16x32xbf16, #tpu.memory_space<vmem>>, %arg2: memref<32x32xbf16, #tpu.memory_space<vmem>>, %arg3: memref<1x32xf32, #tpu.memory_space<vmem>>, %arg4: memref<1x32xf32, #tpu.memory_space<vmem>>, %arg5: memref<1x32xf32, #tpu.memory_space<vmem>>, %arg6: memref<16x32xbf16, #tpu.memory_space<vmem>>) attributes {dimension_semantics = [#tpu.dimension_semantics<parallel>], iteration_bounds = array<i64: 1>, scalar_prefetch = 0 : i64, scratch_operands = 0 : i64, tpu.core_type = #tpu.core_type<tc>, window_params = [{transform_indices = @transform_0, window_bounds = array<i64: 16, 32>}, {pipeline_mode = #tpu.pipeline_mode<synchronous>, transform_indices = @transform_1, window_bounds = array<i64: 32, 32>}, {pipeline_mode = #tpu.pipeline_mode<synchronous>, transform_indices = @transform_2, window_bounds = array<i64: 1, 32>}, {pipeline_mode = #tpu.pipeline_mode<synchronous>, transform_indices = @transform_3, window_bounds = array<i64: 1, 32>}, {pipeline_mode = #tpu.pipeline_mode<synchronous>, transform_indices = @transform_4, window_bounds = array<i64: 1, 32>}, {transform_indices = @transform_5, window_bounds = array<i64: 16, 32>}]} {
    %c0 = arith.constant 0 : index
    %c0_0 = arith.constant 0 : index
    %0 = vector.load %arg1[%c0, %c0_0] : memref<16x32xbf16, #tpu.memory_space<vmem>>, vector<16x32xbf16>
    %c0_1 = arith.constant 0 : index
    %c0_2 = arith.constant 0 : index
    %1 = vector.load %arg2[%c0_1, %c0_2] : memref<32x32xbf16, #tpu.memory_space<vmem>>, vector<32x32xbf16>
    %cst = arith.constant dense<0.000000e+00> : vector<16x32xf32>
    %2 = tpu.matmul %0, %1, %cst {dimension_numbers = #tpu.dot_dimension_numbers<[1], [0], [0], [1], [0, 0, 1, 1], [], []>} : vector<16x32xbf16>, vector<32x32xbf16>, vector<16x32xf32> -> vector<16x32xf32>
    %c0_3 = arith.constant 0 : index
    %c0_4 = arith.constant 0 : index
    %3 = vector.load %arg3[%c0_3, %c0_4] : memref<1x32xf32, #tpu.memory_space<vmem>>, vector<1x32xf32>
    %4 = vector.broadcast %3 : vector<1x32xf32> to vector<16x32xf32>
    %5 = arith.addf %2, %4 : vector<16x32xf32>
    %6 = arith.mulf %5, %5 : vector<16x32xf32>
    %7 = arith.mulf %5, %6 : vector<16x32xf32>
    %cst_5 = arith.constant 4.471500e-02 : f32
    %8 = vector.broadcast %cst_5 : f32 to vector<16x32xf32>
    %9 = arith.mulf %8, %7 : vector<16x32xf32>
    %10 = arith.addf %5, %9 : vector<16x32xf32>
    %cst_6 = arith.constant 0.797884583 : f32
    %11 = vector.broadcast %cst_6 : f32 to vector<16x32xf32>
    %12 = arith.mulf %11, %10 : vector<16x32xf32>
    %13 = math.tanh %12 : vector<16x32xf32>
    %cst_7 = arith.constant 1.000000e+00 : f32
    %14 = vector.broadcast %cst_7 : f32 to vector<16x32xf32>
    %15 = arith.addf %14, %13 : vector<16x32xf32>
    %cst_8 = arith.constant 5.000000e-01 : f32
    %16 = vector.broadcast %cst_8 : f32 to vector<16x32xf32>
    %17 = arith.mulf %16, %15 : vector<16x32xf32>
    %18 = arith.mulf %5, %17 : vector<16x32xf32>
    %cst_9 = arith.constant dense<0.000000e+00> : vector<16xf32>
    %19 = vector.multi_reduction <add>, %18, %cst_9 [1] : vector<16x32xf32> to vector<16xf32>
    %20 = vector.shape_cast %19 : vector<16xf32> to vector<16x1xf32>
    %cst_10 = arith.constant 3.200000e+01 : f32
    %21 = vector.broadcast %cst_10 : f32 to vector<16x1xf32>
    %22 = arith.divf %20, %21 : vector<16x1xf32>
    %23 = arith.mulf %18, %18 : vector<16x32xf32>
    %cst_11 = arith.constant dense<0.000000e+00> : vector<16xf32>
    %24 = vector.multi_reduction <add>, %23, %cst_11 [1] : vector<16x32xf32> to vector<16xf32>
    %25 = vector.shape_cast %24 : vector<16xf32> to vector<16x1xf32>
    %cst_12 = arith.constant 3.200000e+01 : f32
    %26 = vector.broadcast %cst_12 : f32 to vector<16x1xf32>
    %27 = arith.divf %25, %26 : vector<16x1xf32>
    %28 = arith.mulf %22, %22 : vector<16x1xf32>
    %29 = arith.subf %27, %28 : vector<16x1xf32>
    %cst_13 = arith.constant 0.000000e+00 : f32
    %30 = vector.broadcast %cst_13 : f32 to vector<16x1xf32>
    %31 = arith.maximumf %29, %30 : vector<16x1xf32>
    %32 = vector.broadcast %22 : vector<16x1xf32> to vector<16x32xf32>
    %33 = arith.subf %18, %32 : vector<16x32xf32>
    %cst_14 = arith.constant 1.000000e-07 : f32
    %34 = vector.broadcast %cst_14 : f32 to vector<16x1xf32>
    %35 = arith.addf %31, %34 : vector<16x1xf32>
    %36 = math.rsqrt %35 : vector<16x1xf32>
    %37 = vector.broadcast %36 : vector<16x1xf32> to vector<16x32xf32>
    %38 = arith.mulf %33, %37 : vector<16x32xf32>
    %c0_15 = arith.constant 0 : index
    %c0_16 = arith.constant 0 : index
    %39 = vector.load %arg4[%c0_15, %c0_16] : memref<1x32xf32, #tpu.memory_space<vmem>>, vector<1x32xf32>
    %40 = vector.broadcast %39 : vector<1x32xf32> to vector<16x32xf32>
    %41 = arith.mulf %38, %40 : vector<16x32xf32>
    %c0_17 = arith.constant 0 : index
    %c0_18 = arith.constant 0 : index
    %42 = vector.load %arg5[%c0_17, %c0_18] : memref<1x32xf32, #tpu.memory_space<vmem>>, vector<1x32xf32>
    %43 = vector.broadcast %42 : vector<1x32xf32> to vector<16x32xf32>
    %44 = arith.addf %41, %43 : vector<16x32xf32>
    %45 = arith.truncf %44 : vector<16x32xf32> to vector<16x32xbf16>
    %c0_19 = arith.constant 0 : index
    %c0_20 = arith.constant 0 : index
    %46 = vector.load %arg6[%c0_19, %c0_20] : memref<16x32xbf16, #tpu.memory_space<vmem>>, vector<16x32xbf16>
    tpu.vector_store %arg6[%c0_19, %c0_20], %45 {strides = array<i32>} : memref<16x32xbf16, #tpu.memory_space<vmem>>, vector<16x32xbf16>,
    return
  }
  func.func @transform_0(%arg0: i32) -> (i32, i32) {
    %c0_i32 = arith.constant 0 : i32
    %c0_i32_0 = arith.constant 0 : i32
    return %arg0, %c0_i32 : i32, i32
  }
  func.func @transform_1(%arg0: i32) -> (i32, i32) {
    %c0_i32 = arith.constant 0 : i32
    %c0_i32_0 = arith.constant 0 : i32
    %c0_i32_1 = arith.constant 0 : i32
    return %c0_i32, %c0_i32_0 : i32, i32
  }
  func.func @transform_2(%arg0: i32) -> (i32, i32) {
    %c0_i32 = arith.constant 0 : i32
    %c0_i32_0 = arith.constant 0 : i32
    %c0_i32_1 = arith.constant 0 : i32
    return %c0_i32, %c0_i32_0 : i32, i32
  }
  func.func @transform_3(%arg0: i32) -> (i32, i32) {
    %c0_i32 = arith.constant 0 : i32
    %c0_i32_0 = arith.constant 0 : i32
    %c0_i32_1 = arith.constant 0 : i32
    return %c0_i32, %c0_i32_0 : i32, i32
  }
  func.func @transform_4(%arg0: i32) -> (i32, i32) {
    %c0_i32 = arith.constant 0 : i32
    %c0_i32_0 = arith.constant 0 : i32
    %c0_i32_1 = arith.constant 0 : i32
    return %c0_i32, %c0_i32_0 : i32, i32
  }
  func.func @transform_5(%arg0: i32) -> (i32, i32) {
    %c0_i32 = arith.constant 0 : i32
    %c0_i32_0 = arith.constant 0 : i32
    return %arg0, %c0_i32 : i32, i32
  }
}

module attributes {stable_mosaic.version = 11 : i64} {
  func.func @_lmhead_kernel(%arg0: i32, %arg1: i32, %arg2: memref<16x32xbf16, #tpu.memory_space<vmem>>, %arg3: memref<128x32xbf16, #tpu.memory_space<vmem>>, %arg4: memref<1x128xf32, #tpu.memory_space<vmem>>, %arg5: memref<16x128xbf16, #tpu.memory_space<vmem>>, %arg6: memref<16x1xf32, #tpu.memory_space<vmem>>, %arg7: memref<16x1xf32, #tpu.memory_space<vmem>>, %arg8: memref<16x1xf32, #tpu.memory_space<vmem>>) attributes {dimension_semantics = [#tpu.dimension_semantics<parallel>, #tpu.dimension_semantics<arbitrary>], iteration_bounds = array<i64: 1, 1>, scalar_prefetch = 0 : i64, scratch_operands = 2 : i64, tpu.core_type = #tpu.core_type<tc>, window_params = [{transform_indices = @transform_0, window_bounds = array<i64: 16, 32>}, {transform_indices = @transform_1, window_bounds = array<i64: 128, 32>}, {transform_indices = @transform_2, window_bounds = array<i64: 1, 128>}, {transform_indices = @transform_3, window_bounds = array<i64: 16, 128>}, {transform_indices = @transform_4, window_bounds = array<i64: 16, 1>}]} {
    %c0 = arith.constant 0 : index
    %c0_0 = arith.constant 0 : index
    %0 = vector.load %arg2[%c0, %c0_0] : memref<16x32xbf16, #tpu.memory_space<vmem>>, vector<16x32xbf16>
    %c0_1 = arith.constant 0 : index
    %c0_2 = arith.constant 0 : index
    %1 = vector.load %arg3[%c0_1, %c0_2] : memref<128x32xbf16, #tpu.memory_space<vmem>>, vector<128x32xbf16>
    %cst = arith.constant dense<0.000000e+00> : vector<16x128xf32>
    %2 = tpu.matmul %0, %1, %cst {dimension_numbers = #tpu.dot_dimension_numbers<[1], [1], [0], [0], [0, 0, 1, 0], [], []>} : vector<16x32xbf16>, vector<128x32xbf16>, vector<16x128xf32> -> vector<16x128xf32>
    %c0_3 = arith.constant 0 : index
    %c0_4 = arith.constant 0 : index
    %3 = vector.load %arg4[%c0_3, %c0_4] : memref<1x128xf32, #tpu.memory_space<vmem>>, vector<1x128xf32>
    %4 = vector.broadcast %3 : vector<1x128xf32> to vector<16x128xf32>
    %5 = arith.addf %2, %4 : vector<16x128xf32>
    %6 = arith.truncf %5 : vector<16x128xf32> to vector<16x128xbf16>
    %c0_5 = arith.constant 0 : index
    %c0_6 = arith.constant 0 : index
    %7 = vector.load %arg5[%c0_5, %c0_6] : memref<16x128xbf16, #tpu.memory_space<vmem>>, vector<16x128xbf16>
    tpu.vector_store %arg5[%c0_5, %c0_6], %6 {strides = array<i32>} : memref<16x128xbf16, #tpu.memory_space<vmem>>, vector<16x128xbf16>,
    %c0_i32 = arith.constant 0 : i32
    %8 = arith.cmpi eq, %arg1, %c0_i32 : i32
    %9 = arith.extui %8 : i1 to i32
    %c0_i32_7 = arith.constant 0 : i32
    %10 = arith.cmpi ne, %9, %c0_i32_7 : i32
    scf.if %10 {
      %cst_22 = arith.constant 0xFF800000 : f32
      %31 = vector.broadcast %cst_22 : f32 to vector<16x1xf32>
      %c0_23 = arith.constant 0 : index
      %c0_24 = arith.constant 0 : index
      %32 = vector.load %arg7[%c0_23, %c0_24] : memref<16x1xf32, #tpu.memory_space<vmem>>, vector<16x1xf32>
      tpu.vector_store %arg7[%c0_23, %c0_24], %31 {strides = array<i32>} : memref<16x1xf32, #tpu.memory_space<vmem>>, vector<16x1xf32>,
      %cst_25 = arith.constant 0.000000e+00 : f32
      %33 = vector.broadcast %cst_25 : f32 to vector<16x1xf32>
      %c0_26 = arith.constant 0 : index
      %c0_27 = arith.constant 0 : index
      %34 = vector.load %arg8[%c0_26, %c0_27] : memref<16x1xf32, #tpu.memory_space<vmem>>, vector<16x1xf32>
      tpu.vector_store %arg8[%c0_26, %c0_27], %33 {strides = array<i32>} : memref<16x1xf32, #tpu.memory_space<vmem>>, vector<16x1xf32>,
    } else {
    }
    %c0_8 = arith.constant 0 : index
    %c0_9 = arith.constant 0 : index
    %11 = vector.load %arg7[%c0_8, %c0_9] : memref<16x1xf32, #tpu.memory_space<vmem>>, vector<16x1xf32>
    %cst_10 = arith.constant dense<0xFF800000> : vector<16xf32>
    %12 = vector.multi_reduction <maximumf>, %5, %cst_10 [1] : vector<16x128xf32> to vector<16xf32>
    %13 = vector.shape_cast %12 : vector<16xf32> to vector<16x1xf32>
    %14 = arith.maximumf %11, %13 : vector<16x1xf32>
    %c0_11 = arith.constant 0 : index
    %c0_12 = arith.constant 0 : index
    %15 = vector.load %arg7[%c0_11, %c0_12] : memref<16x1xf32, #tpu.memory_space<vmem>>, vector<16x1xf32>
    %16 = arith.subf %15, %14 : vector<16x1xf32>
    %17 = math.exp %16 : vector<16x1xf32>
    %c0_13 = arith.constant 0 : index
    %c0_14 = arith.constant 0 : index
    %18 = vector.load %arg8[%c0_13, %c0_14] : memref<16x1xf32, #tpu.memory_space<vmem>>, vector<16x1xf32>
    %19 = arith.mulf %17, %18 : vector<16x1xf32>
    %20 = vector.broadcast %14 : vector<16x1xf32> to vector<16x128xf32>
    %21 = arith.subf %5, %20 : vector<16x128xf32>
    %22 = math.exp %21 : vector<16x128xf32>
    %cst_15 = arith.constant dense<0.000000e+00> : vector<16xf32>
    %23 = vector.multi_reduction <add>, %22, %cst_15 [1] : vector<16x128xf32> to vector<16xf32>
    %24 = vector.shape_cast %23 : vector<16xf32> to vector<16x1xf32>
    %25 = arith.addf %19, %24 : vector<16x1xf32>
    %c0_16 = arith.constant 0 : index
    %c0_17 = arith.constant 0 : index
    %26 = vector.load %arg8[%c0_16, %c0_17] : memref<16x1xf32, #tpu.memory_space<vmem>>, vector<16x1xf32>
    tpu.vector_store %arg8[%c0_16, %c0_17], %25 {strides = array<i32>} : memref<16x1xf32, #tpu.memory_space<vmem>>, vector<16x1xf32>,
    %c0_18 = arith.constant 0 : index
    %c0_19 = arith.constant 0 : index
    %27 = vector.load %arg7[%c0_18, %c0_19] : memref<16x1xf32, #tpu.memory_space<vmem>>, vector<16x1xf32>
    tpu.vector_store %arg7[%c0_18, %c0_19], %14 {strides = array<i32>} : memref<16x1xf32, #tpu.memory_space<vmem>>, vector<16x1xf32>,
    %c0_i32_20 = arith.constant 0 : i32
    %28 = arith.cmpi eq, %arg1, %c0_i32_20 : i32
    %29 = arith.extui %28 : i1 to i32
    %c0_i32_21 = arith.constant 0 : i32
    %30 = arith.cmpi ne, %29, %c0_i32_21 : i32
    scf.if %30 {
      %c0_22 = arith.constant 0 : index
      %c0_23 = arith.constant 0 : index
      %31 = vector.load %arg7[%c0_22, %c0_23] : memref<16x1xf32, #tpu.memory_space<vmem>>, vector<16x1xf32>
      %c0_24 = arith.constant 0 : index
      %c0_25 = arith.constant 0 : index
      %32 = vector.load %arg8[%c0_24, %c0_25] : memref<16x1xf32, #tpu.memory_space<vmem>>, vector<16x1xf32>
      %33 = math.log %32 : vector<16x1xf32>
      %34 = arith.addf %31, %33 : vector<16x1xf32>
      %c0_26 = arith.constant 0 : index
      %c0_27 = arith.constant 0 : index
      %35 = vector.load %arg6[%c0_26, %c0_27] : memref<16x1xf32, #tpu.memory_space<vmem>>, vector<16x1xf32>
      tpu.vector_store %arg6[%c0_26, %c0_27], %34 {strides = array<i32>} : memref<16x1xf32, #tpu.memory_space<vmem>>, vector<16x1xf32>,
    } else {
    }
    return
  }
  func.func @transform_0(%arg0: i32, %arg1: i32) -> (i32, i32) {
    %c0_i32 = arith.constant 0 : i32
    %c0_i32_0 = arith.constant 0 : i32
    return %arg0, %c0_i32 : i32, i32
  }
  func.func @transform_1(%arg0: i32, %arg1: i32) -> (i32, i32) {
    %c0_i32 = arith.constant 0 : i32
    %c0_i32_0 = arith.constant 0 : i32
    return %arg1, %c0_i32 : i32, i32
  }
  func.func @transform_2(%arg0: i32, %arg1: i32) -> (i32, i32) {
    %c0_i32 = arith.constant 0 : i32
    %c0_i32_0 = arith.constant 0 : i32
    return %c0_i32, %arg1 : i32, i32
  }
  func.func @transform_3(%arg0: i32, %arg1: i32) -> (i32, i32) {
    %c0_i32 = arith.constant 0 : i32
    return %arg0, %arg1 : i32, i32
  }
  func.func @transform_4(%arg0: i32, %arg1: i32) -> (i32, i32) {
    %c0_i32 = arith.constant 0 : i32
    %c0_i32_0 = arith.constant 0 : i32
    return %arg0, %c0_i32 : i32, i32
  }
}

</mosaic_0001>

<bundles_post_ra>
// kernel: rtd_forward.3
= control target key start
LH: loop header
LB: loop body
LE: loop exit
PB: predicated region body
PF: predicated region fallthrough
CT: control target
= control target key end

     0   :  { %v359_v1 = vmov 0.0   ;;  %vm88_vm0 = vcmask 261120   ;;  %vm360_vm1 = vmmov 0   ;;  %s458_s0 = inlined_call_operand.vmem [shape: bf16[16,32], index: 0, kind: input, shape index: {}]   ;;  %s459_s1 = inlined_call_operand.vmem [shape: bf16[128,32], index: 1, kind: input, shape index: {}]   ;;  %s460_s2 = inlined_call_operand.vmem [shape: f32[1,128], index: 2, kind: input, shape index: {}]   ;;  %s461_s3 = inlined_call_operand.hbm [shape: bf16[16,128], index: 3, kind: output, shape index: {0}]   ;;  %s462_s4 = inlined_call_operand.vmem [shape: f32[16,1], index: 4, kind: output, shape index: {1}]  }
   0x1   :  { %v314_v0 = vld [vmem:[%s459_s1] sm:$0xff]   ;;  %285 = vmatprep.subr.bf16.mxu0 %v359_v1  ;;  %v315_v3 = vld [vmem:[%s459_s1 + $0x8] sm:$0xff]   ;;  %301 = vmatprep.mubr.msk.bf16.mxu0 %vm360_vm1, %v359_v1 }
   0x2   :  { %v93_v2 = vsel %vm88_vm0, %v314_v0, 0  ;;  %v96_v4 = vsel %vm88_vm0, %v315_v3, 0 }
   0x3   :  { %286 = vmatpush3.bf16.xpose.msra.mxu0 %v93_v2 }
   0x4   :  { %287 = vmatprep.subr.bf16.mxu0 %v359_v1 }
   0x5   :  { %10 = vsyncpa [#allocation5], 0  ;;  %v316_v5 = vld [vmem:[%s459_s1 + $0x10] sm:$0xff]   ;;  %v317_v7 = vld [vmem:[%s459_s1 + $0x18] sm:$0xff]   ;;  %vm171_vm2 = vcmask 7168   ;;  %v361_v18 = vmov -inf  }
   0x6   :  { %v99_v6 = vsel %vm88_vm0, %v316_v5, 0  ;;  %v102_v8 = vsel %vm88_vm0, %v317_v7, 0  ;;  %v318_v9 = vld [vmem:[%s459_s1 + $0x20] sm:$0xff]   ;;  %v319_v11 = vld [vmem:[%s459_s1 + $0x28] sm:$0xff]   ;;  %v320_v13 = vld [vmem:[%s459_s1 + $0x30] sm:$0xff]   ;;  %172 = vst.msk [vmem:[#allocation2] sm:$0xff] %vm171_vm2, %v361_v18 }
   0x7   :  { %v105_v10 = vsel %vm88_vm0, %v318_v9, 0  ;;  %v108_v12 = vsel %vm88_vm0, %v319_v11, 0  ;;  %v111_v14 = vsel %vm88_vm0, %v320_v13, 0  ;;  %v321_v15 = vld [vmem:[%s459_s1 + $0x38] sm:$0xff]   ;;  %v322_v17 = vld [vmem:[%s458_s0] sm:$0xff]   ;;  %173 = vst.msk [vmem:[#allocation2 + $0x8] sm:$0xff] %vm171_vm2, %v361_v18 }
   0x8   :  { %v114_v16 = vsel %vm88_vm0, %v321_v15, 0  ;;  %174 = vst.msk [vmem:[#allocation3] sm:$0xff] %vm171_vm2, %v359_v1  ;;  %175 = vst.msk [vmem:[#allocation3 + $0x8] sm:$0xff] %vm171_vm2, %v359_v1  ;;  %v256_v19 = vld [vmem:[%s460_s2] ss:$0 sm:$0xff]  ;;  %v362_v27 = vmov 0  }
   0x9   :  { %312 = vset.pattern.permute.xlu1 %v362_v27  ;;  %313 = vset.pattern.permute.xlu0 %v362_v27  ;;  %s363_s0 = smov [#allocation4]  }
   0xa   :  { %s241_s2 = sshll.u32 %s363_s0, 4  ;;  %s242_s2 = int_to_ptr.vmem [resolvable:$true] %s241_s2 }
   0xb   :  { %288 = vmatpush3.bf16.xpose.msra.mxu0 %v96_v4  ;;  %s335_s8 = scalar_lea.vmem %s242_s2, 128  ;;  %p340_p1 = scmp.lt.s32.totalorder %s242_s2, %s242_s2 }
   0xc   :  { %289 = vmatprep.subr.bf16.mxu0 %v359_v1  ;;  %p336_p0 = scmp.ne.s32.totalorder %s242_s2, %s335_s8  ;;  %p341_p2 = scmp.lt.s32.totalorder %s335_s8, %s335_s8 }
   0xd   :  { %v176_v28 = vld [vmem:[#allocation2] sm:$0xff] }
   0xe   :  { %v177_v31 = vld [vmem:[#allocation2 + $0x8] sm:$0xff]  ;;  %p342_p3 = por %p341_p2, %p340_p1 }
  0x10   :  { %p343_p4 = pnand %p342_p3, %p336_p0 }
  0x13   :  { %290 = vmatpush3.bf16.xpose.msra.mxu0 %v99_v6 }
  0x14   :  { %291 = vmatprep.subr.bf16.mxu0 %v359_v1 }
  0x1b   :  { %292 = vmatpush3.bf16.xpose.msra.mxu0 %v102_v8 }
  0x1c   :  { %293 = vmatprep.subr.bf16.mxu0 %v359_v1 }
  0x23   :  { %294 = vmatpush3.bf16.xpose.msra.mxu0 %v105_v10 }
  0x24   :  { %295 = vmatprep.subr.bf16.mxu0 %v359_v1 }
  0x2b   :  { %296 = vmatpush3.bf16.xpose.msra.mxu0 %v108_v12 }
  0x2c   :  { %297 = vmatprep.subr.bf16.mxu0 %v359_v1 }
  0x33   :  { %298 = vmatpush3.bf16.xpose.msra.mxu0 %v111_v14 }
  0x34   :  { %299 = vmatprep.subr.bf16.mxu0 %v359_v1 }
  0x3b   :  { %300 = vmatpush3.bf16.xpose.msra.mxu0 %v114_v16 }
  0x42   :  { %302 = vmatmul.mubr.msk.bf16.vlgmr.msra.gmra.mrb[0].mxu0 %vm88_vm0, %v322_v17 }
 0x115   :  { %v150_v20 = vpop.f32.mrb[0].mxu0 }
 0x116   :  { %v151_v21 = vadd.f32 %v256_v19, %v150_v20  ;;  %v303_v22 = vpop.f32.mrb[1].mxu0 }
 0x117   :  { %v153_v23 = vpop.f32.mrb[2].mxu0 }
 0x118   :  { %v154_v24 = vadd.f32 %v256_v19, %v153_v23  ;;  %178 = vmax.xlane.f32.xlu0 %v151_v21  ;;  %v304_v25 = vpop.f32.mrb[3].mxu0 }
 0x11a   :  { %v274_v26 = vpack.c.bf16 %v154_v24, %v151_v21 }
 0x11c   :  { %275 = vst [vmem:[#allocation4] sm:$0xff] %v274_v26   ;;  %180 = vmax.xlane.f32.xlu0 %v154_v24 }
 0x1a5   :  { %v179_v29 = vpop.xlane.xlu0 %178 }
 0x1a6   :  { %v182_v30 = vmax.f32 %v176_v28, %v179_v29 }
 0x1a8   :  { %v184_v32 = vsub.f32 %v176_v28, %v182_v30  ;;  %219 = vst.msk [vmem:[#allocation2] sm:$0xff] %vm171_vm2, %v182_v30  ;;  %196 = vperm.xlu1 %312, %v182_v30  }
 0x1a9   :  { %v181_v33 = vpop.xlane.xlu0 %180 }
 0x1aa   :  { %v183_v34 = vmax.f32 %v177_v31, %v181_v33 }
 0x1ac   :  { %v185_v35 = vsub.f32 %v177_v31, %v183_v34  ;;  %220 = vst.msk [vmem:[#allocation2 + $0x8] sm:$0xff] %vm171_vm2, %v183_v34  ;;  %201 = vperm.xlu1 %312, %v183_v34  }
 0x227   :  { %v197_v36 = vpop.permute.xlu1 %196 }
 0x228   :  { %v204_v37 = vsub.f32 %v151_v21, %v197_v36 }
 0x22a   :  { %v206_v38 = vmul.f32 1.442695, %v204_v37 }
 0x22b   :  { %v202_v39 = vpop.permute.xlu1 %201 }
 0x22c   :  { %323 = vpow2.f32 %v206_v38  ;;  %v205_v40 = vsub.f32 %v154_v24, %v202_v39 }
 0x22e   :  { %v208_v41 = vmul.f32 1.442695, %v205_v40 }
 0x230   :  { %325 = vpow2.f32 %v208_v41 }
 0x236   :  { %v324_v42 = vpop.eup %323 }
 0x237   :  { %210 = vadd.xlane.f32.xlu0 %v324_v42 }
 0x23a   :  { %v326_v43 = vpop.eup %325 }
 0x23b   :  { %212 = vadd.xlane.f32.xlu1 %v326_v43 }
 0x23c   :  { %346 = shalt.err (!%p343_p4)
}
 0x23d   :  { %s347_s11 = scalar_lea.hbm %s461_s3, 128 }
 0x23e   :  { %p348_p5 = scmp.ne.s32.totalorder %s461_s3, %s347_s11  ;;  %p351_p6 = scmp.lt.u32.totalorder %s347_s11, %s461_s3 }
 0x240   :  { %p353_p7 = pnand %p351_p6, %p348_p5 }
 0x242   :  { %356 = shalt.err (!%p353_p7)
}
 0x243   :  { %s364_s16 = smov 64   ;;  %s365_s17 = smov 4   ;;  %v186_v44 = vmul.f32 1.442695, %v184_v32  ;;  %v188_v45 = vmul.f32 1.442695, %v185_v35 }
 0x244   :  { %247 = dma.vmem_to_hbm [thread:$0]  %s242_s2, 128, %s461_s3, [#allocation5], %s364_s16, %s364_s16, %s365_s17   ;;  %v190_v47 = vld [vmem:[#allocation3] sm:$0xff]  ;;  %v191_v51 = vld [vmem:[#allocation3 + $0x8] sm:$0xff]  ;;  %v224_v60 = vld [vmem:[#allocation2] sm:$0xff] }
 0x245   :  { %327 = vpow2.f32 %v186_v44  ;;  %v225_v0 = vld [vmem:[#allocation2 + $0x8] sm:$0xff] }
 0x246   :  { %329 = vpow2.f32 %v188_v45 }
 0x24f   :  { %v328_v46 = vpop.eup %327 }
 0x250   :  { %v192_v48 = vmul.f32 %v328_v46, %v190_v47  ;;  %v330_v49 = vpop.eup %329 }
 0x251   :  { %v193_v53 = vmul.f32 %v330_v49, %v191_v51 }
 0x2c4   :  { %v211_v50 = vpop.xlane.xlu0 %210 }
 0x2c5   :  { %v214_v52 = vadd.f32 %v211_v50, %v192_v48 }
 0x2c7   :  { %217 = vst.msk [vmem:[#allocation3] sm:$0xff] %vm171_vm2, %v214_v52 }
 0x2c8   :  { %v213_v54 = vpop.xlane.xlu1 %212 }
 0x2c9   :  { %v215_v55 = vadd.f32 %v213_v54, %v193_v53 }
 0x2cb   :  { %218 = vst.msk [vmem:[#allocation3 + $0x8] sm:$0xff] %vm171_vm2, %v215_v55 }
 0x2ce   :  { %v226_v56 = vld [vmem:[#allocation3] sm:$0xff] }
 0x2cf   :  { %331 = vlog2.f32 %v226_v56 }
 0x2d2   :  { %v227_v57 = vld [vmem:[#allocation3 + $0x8] sm:$0xff] }
 0x2d3   :  { %333 = vlog2.f32 %v227_v57 }
 0x2d9   :  { %v332_v58 = vpop.eup %331 }
 0x2da   :  { %v229_v59 = vmul.f32 0.6931472, %v332_v58 }
 0x2dc   :  { %v232_v61 = vadd.f32 %v229_v59, %v224_v60 }
 0x2dd   :  { %v334_v62 = vpop.eup %333 }
 0x2de   :  { %234 = vst.msk [vmem:[%s462_s4] sm:$0xff] %vm171_vm2, %v232_v61  ;;  %v231_v63 = vmul.f32 0.6931472, %v334_v62 }
 0x2e0   :  { %v233_v1 = vadd.f32 %v231_v63, %v225_v0 }
 0x2e2   :  { %235 = vst.msk [vmem:[%s462_s4 + $0x8] sm:$0xff] %vm171_vm2, %v233_v1 }
 0x2e3   :  { %357 = dma.done.wait [#allocation5], 128  }
 0x2e4   :  { %358 = vsyncadd [#allocation5], 4294967168 }
 0x2e5   :  { %255 = vsyncpa [#allocation5], 1 }

// kernel: rtd_forward.2
= control target key start
LH: loop header
LB: loop body
LE: loop exit
PB: predicated region body
PF: predicated region fallthrough
CT: control target
= control target key end

     0   :  { %v215_v0 = vmov 0.0   ;;  %vm216_vm0 = vmmov 0   ;;  %vm51_vm1 = vcmask 261120   ;;  %vm173_vm2 = vcmask 257024   ;;  %s276_s1 = inlined_call_operand.vmem [shape: bf16[32,32], index: 1, kind: input, shape index: {}]   ;;  %s277_s0 = inlined_call_operand.vmem [shape: bf16[16,32], index: 0, kind: input, shape index: {}]   ;;  %s278_s2 = inlined_call_operand.vmem [shape: f32[1,32], index: 2, kind: input, shape index: {}]   ;;  %s279_s3 = inlined_call_operand.vmem [shape: f32[1,32], index: 3, kind: input, shape index: {}]   ;;  %s280_s4 = inlined_call_operand.vmem [shape: f32[1,32], index: 4, kind: input, shape index: {}]   ;;  %s281_s5 = inlined_call_operand.vmem [shape: bf16[16,32], index: 5, kind: output, shape index: {}]  }
   0x1   :  { %194 = vmatprep.subr.bf16.mxu0 %v215_v0  ;;  %v204_v1 = vld [vmem:[%s276_s1] sm:$0xff]   ;;  %198 = vmatprep.mubr.msk.bf16.mxu0 %vm216_vm0, %v215_v0  ;;  %v205_v2 = vld [vmem:[%s276_s1 + $0x8] sm:$0xff]  }
   0x2   :  { %195 = vmatpush3.bf16.msra.mxu0 %v204_v1  ;;  %v206_v3 = vld [vmem:[%s277_s0] sm:$0xff]  }
   0x3   :  { %196 = vmatprep.subr.bf16.mxu0 %v215_v0  ;;  %v180_v4 = vld [vmem:[%s278_s2] ss:$0 sm:$0xff] }
   0x4   :  { %v185_v53 = vld [vmem:[%s279_s3] ss:$0 sm:$0xff] }
   0x5   :  { %v186_v55 = vld [vmem:[%s280_s4] ss:$0 sm:$0xff] }
   0x6   :  { %197 = vmatpush3.bf16.msra.mxu0 %v205_v2 }
   0x9   :  { %199 = vmatmul.mubr.msk.bf16.vlgmr.msra.gmra.mrb[0].mxu0 %vm51_vm1, %v206_v3 }
  0xdc   :  { %v89_v5 = vpop.f32.mrb[0].mxu0 }
  0xdd   :  { %v90_v6 = vadd.f32 %v180_v4, %v89_v5  ;;  %v200_v7 = vpop.f32.mrb[1].mxu0 }
  0xde   :  { %v92_v8 = vpop.f32.mrb[2].mxu0 }
  0xdf   :  { %v96_v9 = vmul.f32 %v90_v6, %v90_v6  ;;  %v93_v10 = vadd.f32 %v180_v4, %v92_v8  ;;  %v201_v11 = vpop.f32.mrb[3].mxu0 }
  0xe1   :  { %v98_v12 = vmul.f32 %v96_v9, %v90_v6  ;;  %v97_v13 = vmul.f32 %v93_v10, %v93_v10 }
  0xe3   :  { %v100_v14 = vmul.f32 0.044715, %v98_v12  ;;  %v99_v15 = vmul.f32 %v97_v13, %v93_v10 }
  0xe5   :  { %v102_v16 = vadd.f32 %v100_v14, %v90_v6  ;;  %v101_v17 = vmul.f32 0.044715, %v99_v15 }
  0xe7   :  { %v104_v18 = vmul.f32 0.7978846, %v102_v16  ;;  %v103_v19 = vadd.f32 %v101_v17, %v93_v10 }
  0xe9   :  { %v105_v20 = vmul.f32 0.7978846, %v103_v19  ;;  %207 = vtanh.f32 %v104_v18 }
  0xeb   :  { %209 = vtanh.f32 %v105_v20 }
  0xf3   :  { %v208_v21 = vpop.eup %207 }
  0xf4   :  { %v108_v22 = vadd.f32 1.0, %v208_v21 }
  0xf5   :  { %v210_v23 = vpop.eup %209 }
  0xf6   :  { %v110_v24 = vmul.f32 0.5, %v108_v22  ;;  %v109_v25 = vadd.f32 1.0, %v210_v23 }
  0xf8   :  { %v112_v26 = vmul.f32 %v110_v24, %v90_v6  ;;  %v111_v27 = vmul.f32 0.5, %v109_v25 }
  0xfa   :  { %v114_v28 = vsel %vm51_vm1, %v112_v26, 0.0  ;;  %v123_v29 = vmul.f32 %v112_v26, %v112_v26  ;;  %v113_v30 = vmul.f32 %v111_v27, %v93_v10 }
  0xfb   :  { %115 = vadd.xlane.f32.xlu0 %v114_v28 }
  0xfc   :  { %v125_v31 = vsel %vm51_vm1, %v123_v29, 0.0  ;;  %v124_v32 = vmul.f32 %v113_v30, %v113_v30  ;;  %v117_v33 = vsel %vm51_vm1, %v113_v30, 0.0 }
  0xfd   :  { %126 = vadd.xlane.f32.xlu1 %v125_v31 }
  0xfe   :  { %v128_v34 = vsel %vm51_vm1, %v124_v32, 0.0 }
  0xff   :  { %118 = vadd.xlane.f32.xlu0 %v117_v33 }
 0x101   :  { %129 = vadd.xlane.f32.xlu1 %v128_v34 }
 0x188   :  { %v116_v35 = vpop.xlane.xlu0 %115 }
 0x189   :  { %v121_v36 = vmul.f32 0.03125, %v116_v35 }
 0x18a   :  { %v127_v37 = vpop.xlane.xlu1 %126 }
 0x18b   :  { %v133_v38 = vmul.f32 %v121_v36, %v121_v36  ;;  %v131_v39 = vmul.f32 0.03125, %v127_v37  ;;  %v139_v51 = vsub.f32 %v112_v26, %v121_v36 }
 0x18c   :  { %v119_v40 = vpop.xlane.xlu0 %118 }
 0x18d   :  { %v135_v41 = vsub.f32 %v131_v39, %v133_v38  ;;  %v122_v42 = vmul.f32 0.03125, %v119_v40 }
 0x18e   :  { %v130_v43 = vpop.xlane.xlu1 %129 }
 0x18f   :  { %v137_v44 = vmax.f32 %v135_v41, 0.0  ;;  %v134_v45 = vmul.f32 %v122_v42, %v122_v42  ;;  %v132_v46 = vmul.f32 0.03125, %v130_v43  ;;  %v140_v57 = vsub.f32 %v113_v30, %v122_v42 }
 0x191   :  { %v141_v47 = vadd.f32 1e-07, %v137_v44  ;;  %v136_v48 = vsub.f32 %v132_v46, %v134_v45 }
 0x193   :  { %211 = vrsqrt.f32 %v141_v47  ;;  %v138_v49 = vmax.f32 %v136_v48, 0.0 }
 0x195   :  { %v142_v50 = vadd.f32 1e-07, %v138_v49 }
 0x197   :  { %213 = vrsqrt.f32 %v142_v50 }
 0x19d   :  { %v212_v52 = vpop.eup %211 }
 0x19e   :  { %v145_v54 = vmul.f32 %v212_v52, %v139_v51 }
 0x1a0   :  { %v154_v56 = vmul.f32 %v185_v53, %v145_v54 }
 0x1a1   :  { %v214_v58 = vpop.eup %213 }
 0x1a2   :  { %v163_v59 = vadd.f32 %v186_v55, %v154_v56  ;;  %v146_v60 = vmul.f32 %v214_v58, %v140_v57 }
 0x1a4   :  { %v189_v61 = vpack.c.bf16 %v163_v59, %v163_v59  ;;  %v155_v62 = vmul.f32 %v185_v53, %v146_v60 }
 0x1a6   :  { %174 = vst.msk [vmem:[%s281_s5] sm:$0xf] %vm173_vm2, %v189_v61  ;;  %v164_v63 = vadd.f32 %v186_v55, %v155_v62 }
 0x1a8   :  { %v190_v0 = vpack.c.bf16 %v164_v63, %v164_v63 }
 0x1aa   :  { %175 = vst.msk [vmem:[%s281_s5 + $0x4] sm:$0xf] %vm173_vm2, %v190_v0 }

</bundles_post_ra>
